<compile_context>
chip_gen: v7x
topology: tpu7x:2x2x1
jax: 0.10.0
libtpu: 0.0.40
codegen_flags: <defaults>
</compile_context>

<pallas_src>
import jax
import jax.numpy as jnp
from jax.experimental import pallas as pl
from jax.experimental.pallas import tpu as pltpu


def _composite_kernel(inp_ref, incls_ref, w1_ref, b1_ref, w2_ref, b2_ref,
                      w3_ref, b3_ref, out_ref):
    """Fused: build composite from (inp, incls), run MLP + 2-class softmax,
    write the full-width output row (passthrough columns + 2 prob columns)."""
    tb, D = inp_ref.shape
    inp = inp_ref[...].astype(jnp.float32)                      # (tb, D)
    incls = incls_ref[...].astype(jnp.float32)                  # (tb, 2)

    x_tail = inp[:, D - 2:D]                                    # input[:, -2:]  (tb, 2)

    # Linear(4, 64) on composite = [x_tail | incls]; split W1's rows so the
    # concat never needs to materialize:  comp @ W1 = x_tail @ W1[:2] + incls @ W1[2:]
    h1 = (jnp.dot(x_tail, w1_ref[0:2, :], preferred_element_type=jnp.float32)
          + jnp.dot(incls, w1_ref[2:4, :], preferred_element_type=jnp.float32)
          + b1_ref[...])
    h1 = jnp.maximum(h1, 0.0)                                   # ReLU, (tb, 64)

    # Linear(64, 16) + ReLU
    h2 = jnp.dot(h1, w2_ref[...], preferred_element_type=jnp.float32) + b2_ref[...]
    h2 = jnp.maximum(h2, 0.0)                                   # (tb, 16)

    # Linear(16, 2)
    logits = jnp.dot(h2, w3_ref[...], preferred_element_type=jnp.float32) + b3_ref[...]
    l0 = logits[:, 0:1]                                         # (tb, 1)
    l1 = logits[:, 1:2]                                         # (tb, 1)

    # 2-class softmax == pair of sigmoids (exact; no cross-lane XLU reductions).
    p0 = 1.0 / (1.0 + jnp.exp(l1 - l0))                         # softmax(...)[:, 0]
    p1 = 1.0 / (1.0 + jnp.exp(l0 - l1))                         # softmax(...)[:, 1]

    # Single full-width, lane-dense store:
    #   cols [0, D-2) -> passthrough of input ; col D-2 -> p0 ; col D-1 -> p1
    col = jax.lax.broadcasted_iota(jnp.int32, (tb, D), 1)
    out = jnp.where(col < D - 2, inp, jnp.where(col == D - 2, p0, p1))
    out_ref[...] = out.astype(out_ref.dtype)


def composite_forward(inp, incls, params, *, batch_tile=512):
    """JAX wrapper. Entire forward (concat + MLP + softmax + concat) is one
    Pallas call; the input is read from HBM exactly once and the output is
    written exactly once."""
    w1, b1, w2, b2, w3, b3 = params
    B, D = inp.shape
    assert D >= 2 and incls.shape == (B, 2)

    # Big batch tile to amortize per-grid-step overhead; multiple of 8 when
    # tiling, or the full batch when B is small.
    tb = B if B <= batch_tile else batch_tile
    grid = (pl.cdiv(B, tb),)

    return pl.pallas_call(
        _composite_kernel,
        out_shape=jax.ShapeDtypeStruct((B, D), inp.dtype),
        grid_spec=pltpu.PrefetchScalarGridSpec(
            num_scalar_prefetch=0,
            grid=grid,
            in_specs=[
                pl.BlockSpec((tb, D), lambda i: (i, 0)),    # input tile (full width)
                pl.BlockSpec((tb, 2), lambda i: (i, 0)),    # incls tile
                pl.BlockSpec((4, 64), lambda i: (0, 0)),    # W1 (full, resident)
                pl.BlockSpec((1, 64), lambda i: (0, 0)),    # b1
                pl.BlockSpec((64, 16), lambda i: (0, 0)),   # W2
                pl.BlockSpec((1, 16), lambda i: (0, 0)),    # b2
                pl.BlockSpec((16, 2), lambda i: (0, 0)),    # W3
                pl.BlockSpec((1, 2), lambda i: (0, 0)),     # b3
            ],
            out_specs=pl.BlockSpec((tb, D), lambda i: (i, 0)),
        ),
        compiler_params=pltpu.CompilerParams(
            dimension_semantics=("parallel",)),   # megacore shards the batch grid
    )(inp, incls, w1, b1, w2, b2, w3, b3)


def init_params(key):
    """Deterministic parameter init (shapes from the module's __init__)."""
    k1, k2, k3, k4, k5, k6 = jax.random.split(key, 6)
    # weights stored as (in, out) == PyTorch weight.T
    w1 = jax.random.normal(k1, (4, 64), jnp.float32) * 0.1
    b1 = jax.random.normal(k2, (1, 64), jnp.float32) * 0.1
    w2 = jax.random.normal(k3, (64, 16), jnp.float32) * 0.1
    b2 = jax.random.normal(k4, (1, 16), jnp.float32) * 0.1
    w3 = jax.random.normal(k5, (16, 2), jnp.float32) * 0.1
    b3 = jax.random.normal(k6, (1, 2), jnp.float32) * 0.1
    return (w1, b1, w2, b2, w3, b3)


def _reference(inp, incls, params):
    """Pure-JAX reference for correctness check (mirrors the PyTorch module)."""
    w1, b1, w2, b2, w3, b3 = params
    comp = jnp.concatenate([inp[:, -2:], incls], axis=1)
    h1 = jax.nn.relu(comp @ w1 + b1)
    h2 = jax.nn.relu(h1 @ w2 + b2)
    act = jax.nn.softmax(h2 @ w3 + b3, axis=1)
    return jnp.concatenate([inp[:, :-2], act], axis=1)


if __name__ == "__main__":
    key = jax.random.PRNGKey(0)
    k_in, k_cls, k_p, k_in2, k_cls2 = jax.random.split(key, 5)
    params = init_params(k_p)

    # Small-shape check (single grid step, tb == B).
    B, D = 8, 16
    inp = jax.random.normal(k_in, (B, D), jnp.float32)
    incls = jax.random.normal(k_cls, (B, 2), jnp.float32)
    out = jax.block_until_ready(composite_forward(inp, incls, params))
    ref = _reference(inp, incls, params)
    assert out.shape == (B, D), out.shape
    assert jnp.allclose(out, ref, atol=1e-5, rtol=1e-5), "mismatch vs reference (small)"

    # Tiled check: multiple grid steps + a clipped final block (80 = 2*32 + 16).
    B2 = 80
    inp2 = jax.random.normal(k_in2, (B2, D), jnp.float32)
    incls2 = jax.random.normal(k_cls2, (B2, 2), jnp.float32)
    out2 = jax.block_until_ready(
        composite_forward(inp2, incls2, params, batch_tile=32))
    ref2 = _reference(inp2, incls2, params)
    assert out2.shape == (B2, D), out2.shape
    assert jnp.allclose(out2, ref2, atol=1e-5, rtol=1e-5), "mismatch vs reference (tiled)"

    print("KERNEL_OK")
</pallas_src>

<mosaic_0001>
module attributes {stable_mosaic.version = 11 : i64} {
  func.func @_composite_kernel(%arg0: i32, %arg1: memref<8x16xf32, #tpu.memory_space<vmem>>, %arg2: memref<8x2xf32, #tpu.memory_space<vmem>>, %arg3: memref<4x64xf32, #tpu.memory_space<vmem>>, %arg4: memref<1x64xf32, #tpu.memory_space<vmem>>, %arg5: memref<64x16xf32, #tpu.memory_space<vmem>>, %arg6: memref<1x16xf32, #tpu.memory_space<vmem>>, %arg7: memref<16x2xf32, #tpu.memory_space<vmem>>, %arg8: memref<1x2xf32, #tpu.memory_space<vmem>>, %arg9: memref<8x16xf32, #tpu.memory_space<vmem>>) attributes {dimension_semantics = [#tpu.dimension_semantics<parallel>], iteration_bounds = array<i64: 1>, scalar_prefetch = 0 : i64, scratch_operands = 0 : i64, tpu.core_type = #tpu.core_type<tc>, window_params = [{transform_indices = @transform_0, window_bounds = array<i64: 8, 16>}, {transform_indices = @transform_1, window_bounds = array<i64: 8, 2>}, {pipeline_mode = #tpu.pipeline_mode<synchronous>, transform_indices = @transform_2, window_bounds = array<i64: 4, 64>}, {pipeline_mode = #tpu.pipeline_mode<synchronous>, transform_indices = @transform_3, window_bounds = array<i64: 1, 64>}, {pipeline_mode = #tpu.pipeline_mode<synchronous>, transform_indices = @transform_4, window_bounds = array<i64: 64, 16>}, {pipeline_mode = #tpu.pipeline_mode<synchronous>, transform_indices = @transform_5, window_bounds = array<i64: 1, 16>}, {pipeline_mode = #tpu.pipeline_mode<synchronous>, transform_indices = @transform_6, window_bounds = array<i64: 16, 2>}, {pipeline_mode = #tpu.pipeline_mode<synchronous>, transform_indices = @transform_7, window_bounds = array<i64: 1, 2>}, {transform_indices = @transform_8, window_bounds = array<i64: 8, 16>}]} {
    %c0 = arith.constant 0 : index
    %c0_0 = arith.constant 0 : index
    %0 = vector.load %arg1[%c0, %c0_0] : memref<8x16xf32, #tpu.memory_space<vmem>>, vector<8x16xf32>
    %c0_1 = arith.constant 0 : index
    %c0_2 = arith.constant 0 : index
    %1 = vector.load %arg2[%c0_1, %c0_2] : memref<8x2xf32, #tpu.memory_space<vmem>>, vector<8x2xf32>
    %2 = vector.extract_strided_slice %0 {offsets = [0, 14], sizes = [8, 2], strides = [1, 1]} : vector<8x16xf32> to vector<8x2xf32>
    %c0_3 = arith.constant 0 : index
    %c0_4 = arith.constant 0 : index
    %3 = vector.load %arg3[%c0_3, %c0_4] : memref<4x64xf32, #tpu.memory_space<vmem>>, vector<2x64xf32>
    %cst = arith.constant dense<0.000000e+00> : vector<8x64xf32>
    %4 = tpu.matmul %2, %3, %cst {dimension_numbers = #tpu.dot_dimension_numbers<[1], [0], [0], [1], [0, 0, 1, 1], [], []>} : vector<8x2xf32>, vector<2x64xf32>, vector<8x64xf32> -> vector<8x64xf32>
    %c2 = arith.constant 2 : index
    %c0_5 = arith.constant 0 : index
    %5 = vector.load %arg3[%c2, %c0_5] : memref<4x64xf32, #tpu.memory_space<vmem>>, vector<2x64xf32>
    %cst_6 = arith.constant dense<0.000000e+00> : vector<8x64xf32>
    %6 = tpu.matmul %1, %5, %cst_6 {dimension_numbers = #tpu.dot_dimension_numbers<[1], [0], [0], [1], [0, 0, 1, 1], [], []>} : vector<8x2xf32>, vector<2x64xf32>, vector<8x64xf32> -> vector<8x64xf32>
    %7 = arith.addf %4, %6 : vector<8x64xf32>
    %c0_7 = arith.constant 0 : index
    %c0_8 = arith.constant 0 : index
    %8 = vector.load %arg4[%c0_7, %c0_8] : memref<1x64xf32, #tpu.memory_space<vmem>>, vector<1x64xf32>
    %9 = vector.broadcast %8 : vector<1x64xf32> to vector<8x64xf32>
    %10 = arith.addf %7, %9 : vector<8x64xf32>
    %cst_9 = arith.constant 0.000000e+00 : f32
    %11 = vector.broadcast %cst_9 : f32 to vector<8x64xf32>
    %12 = arith.maximumf %10, %11 : vector<8x64xf32>
    %c0_10 = arith.constant 0 : index
    %c0_11 = arith.constant 0 : index
    %13 = vector.load %arg5[%c0_10, %c0_11] : memref<64x16xf32, #tpu.memory_space<vmem>>, vector<64x16xf32>
    %cst_12 = arith.constant dense<0.000000e+00> : vector<8x16xf32>
    %14 = tpu.matmul %12, %13, %cst_12 {dimension_numbers = #tpu.dot_dimension_numbers<[1], [0], [0], [1], [0, 0, 1, 1], [], []>} : vector<8x64xf32>, vector<64x16xf32>, vector<8x16xf32> -> vector<8x16xf32>
    %c0_13 = arith.constant 0 : index
    %c0_14 = arith.constant 0 : index
    %15 = vector.load %arg6[%c0_13, %c0_14] : memref<1x16xf32, #tpu.memory_space<vmem>>, vector<1x16xf32>
    %16 = vector.broadcast %15 : vector<1x16xf32> to vector<8x16xf32>
    %17 = arith.addf %14, %16 : vector<8x16xf32>
    %cst_15 = arith.constant 0.000000e+00 : f32
    %18 = vector.broadcast %cst_15 : f32 to vector<8x16xf32>
    %19 = arith.maximumf %17, %18 : vector<8x16xf32>
    %c0_16 = arith.constant 0 : index
    %c0_17 = arith.constant 0 : index
    %20 = vector.load %arg7[%c0_16, %c0_17] : memref<16x2xf32, #tpu.memory_space<vmem>>, vector<16x2xf32>
    %cst_18 = arith.constant dense<0.000000e+00> : vector<8x2xf32>
    %21 = tpu.matmul %19, %20, %cst_18 {dimension_numbers = #tpu.dot_dimension_numbers<[1], [0], [0], [1], [0, 0, 1, 1], [], []>} : vector<8x16xf32>, vector<16x2xf32>, vector<8x2xf32> -> vector<8x2xf32>
    %c0_19 = arith.constant 0 : index
    %c0_20 = arith.constant 0 : index
    %22 = vector.load %arg8[%c0_19, %c0_20] : memref<1x2xf32, #tpu.memory_space<vmem>>, vector<1x2xf32>
    %23 = vector.broadcast %22 : vector<1x2xf32> to vector<8x2xf32>
    %24 = arith.addf %21, %23 : vector<8x2xf32>
    %25 = vector.extract_strided_slice %24 {offsets = [0, 0], sizes = [8, 1], strides = [1, 1]} : vector<8x2xf32> to vector<8x1xf32>
    %26 = vector.extract_strided_slice %24 {offsets = [0, 1], sizes = [8, 1], strides = [1, 1]} : vector<8x2xf32> to vector<8x1xf32>
    %27 = arith.subf %26, %25 : vector<8x1xf32>
    %28 = math.exp %27 : vector<8x1xf32>
    %cst_21 = arith.constant 1.000000e+00 : f32
    %29 = vector.broadcast %cst_21 : f32 to vector<8x1xf32>
    %30 = arith.addf %29, %28 : vector<8x1xf32>
    %cst_22 = arith.constant 1.000000e+00 : f32
    %31 = vector.broadcast %cst_22 : f32 to vector<8x1xf32>
    %32 = arith.divf %31, %30 : vector<8x1xf32>
    %33 = arith.subf %25, %26 : vector<8x1xf32>
    %34 = math.exp %33 : vector<8x1xf32>
    %cst_23 = arith.constant 1.000000e+00 : f32
    %35 = vector.broadcast %cst_23 : f32 to vector<8x1xf32>
    %36 = arith.addf %35, %34 : vector<8x1xf32>
    %cst_24 = arith.constant 1.000000e+00 : f32
    %37 = vector.broadcast %cst_24 : f32 to vector<8x1xf32>
    %38 = arith.divf %37, %36 : vector<8x1xf32>
    %39 = tpu.iota {dimensions = array<i32: 1>} : vector<8x16xi32>
    %c14_i32 = arith.constant 14 : i32
    %40 = vector.broadcast %c14_i32 : i32 to vector<8x16xi32>
    %41 = arith.cmpi slt, %39, %40 : vector<8x16xi32>
    %c14_i32_25 = arith.constant 14 : i32
    %42 = vector.broadcast %c14_i32_25 : i32 to vector<8x16xi32>
    %43 = arith.cmpi eq, %39, %42 : vector<8x16xi32>
    %44 = vector.shape_cast %32 : vector<8x1xf32> to vector<8x1xf32>
    %45 = vector.broadcast %44 : vector<8x1xf32> to vector<8x16xf32>
    %46 = vector.shape_cast %38 : vector<8x1xf32> to vector<8x1xf32>
    %47 = vector.broadcast %46 : vector<8x1xf32> to vector<8x16xf32>
    %48 = arith.select %43, %45, %47 : vector<8x16xi1>, vector<8x16xf32>
    %49 = arith.select %41, %0, %48 : vector<8x16xi1>, vector<8x16xf32>
    %c0_26 = arith.constant 0 : index
    %c0_27 = arith.constant 0 : index
    %50 = vector.load %arg9[%c0_26, %c0_27] : memref<8x16xf32, #tpu.memory_space<vmem>>, vector<8x16xf32>
    tpu.vector_store %arg9[%c0_26, %c0_27], %49 {strides = array<i32>} : memref<8x16xf32, #tpu.memory_space<vmem>>, vector<8x16xf32>,
    return
  }
  func.func @transform_0(%arg0: i32) -> (i32, i32) {
    %c0_i32 = arith.constant 0 : i32
    %c0_i32_0 = arith.constant 0 : i32
    return %arg0, %c0_i32 : i32, i32
  }
  func.func @transform_1(%arg0: i32) -> (i32, i32) {
    %c0_i32 = arith.constant 0 : i32
    %c0_i32_0 = arith.constant 0 : i32
    return %arg0, %c0_i32 : i32, i32
  }
  func.func @transform_2(%arg0: i32) -> (i32, i32) {
    %c0_i32 = arith.constant 0 : i32
    %c0_i32_0 = arith.constant 0 : i32
    %c0_i32_1 = arith.constant 0 : i32
    return %c0_i32, %c0_i32_0 : i32, i32
  }
  func.func @transform_3(%arg0: i32) -> (i32, i32) {
    %c0_i32 = arith.constant 0 : i32
    %c0_i32_0 = arith.constant 0 : i32
    %c0_i32_1 = arith.constant 0 : i32
    return %c0_i32, %c0_i32_0 : i32, i32
  }
  func.func @transform_4(%arg0: i32) -> (i32, i32) {
    %c0_i32 = arith.constant 0 : i32
    %c0_i32_0 = arith.constant 0 : i32
    %c0_i32_1 = arith.constant 0 : i32
    return %c0_i32, %c0_i32_0 : i32, i32
  }
  func.func @transform_5(%arg0: i32) -> (i32, i32) {
    %c0_i32 = arith.constant 0 : i32
    %c0_i32_0 = arith.constant 0 : i32
    %c0_i32_1 = arith.constant 0 : i32
    return %c0_i32, %c0_i32_0 : i32, i32
  }
  func.func @transform_6(%arg0: i32) -> (i32, i32) {
    %c0_i32 = arith.constant 0 : i32
    %c0_i32_0 = arith.constant 0 : i32
    %c0_i32_1 = arith.constant 0 : i32
    return %c0_i32, %c0_i32_0 : i32, i32
  }
  func.func @transform_7(%arg0: i32) -> (i32, i32) {
    %c0_i32 = arith.constant 0 : i32
    %c0_i32_0 = arith.constant 0 : i32
    %c0_i32_1 = arith.constant 0 : i32
    return %c0_i32, %c0_i32_0 : i32, i32
  }
  func.func @transform_8(%arg0: i32) -> (i32, i32) {
    %c0_i32 = arith.constant 0 : i32
    %c0_i32_0 = arith.constant 0 : i32
    return %arg0, %c0_i32 : i32, i32
  }
}

</mosaic_0001>

<bundles_post_ra>
// kernel: tpu_custom_call.1
= control target key start
LH: loop header
LB: loop body
LE: loop exit
PB: predicated region body
PF: predicated region fallthrough
CT: control target
= control target key end

     0   :  { %vm38_vm0 = vcmask 1041408   ;;  %s541_s9 = smov 114   ;;  %v542_v2 = vmov 0.0   ;;  %vm34_vm1 = vcmask 15360   ;;  %vm543_vm2 = vmmov 0   ;;  %s672_s0 = inlined_call_operand.vmem [shape: f32[8,16], index: 0, kind: input, shape index: {}]   ;;  %s673_s1 = inlined_call_operand.vmem [shape: f32[8,2], index: 1, kind: input, shape index: {}]   ;;  %s674_s2 = inlined_call_operand.vmem [shape: f32[4,64], index: 2, kind: input, shape index: {}]   ;;  %s675_s3 = inlined_call_operand.vmem [shape: f32[1,64], index: 3, kind: input, shape index: {}]   ;;  %s676_s4 = inlined_call_operand.vmem [shape: f32[64,16], index: 4, kind: input, shape index: {}]   ;;  %s677_s5 = inlined_call_operand.vmem [shape: f32[1,16], index: 5, kind: input, shape index: {}]   ;;  %s678_s6 = inlined_call_operand.vmem [shape: f32[16,2], index: 6, kind: input, shape index: {}]   ;;  %s679_s7 = inlined_call_operand.vmem [shape: f32[1,2], index: 7, kind: input, shape index: {}]   ;;  %s680_s8 = inlined_call_operand.hbm [shape: f32[8,16], index: 8, kind: output, shape index: {}]  }
   0x1   :  { %v598_v0 = vld [vmem:[%s672_s0] sm:$0xff]  ;;  %447 = vmatprep.subr.mxu1 %v542_v2  ;;  %449 = vmatprep.mubr.msk.f32.mxu1 %vm543_vm2, %v542_v2  ;;  %v200_v6 = vld [vmem:[%s676_s4 + $0x8] sm:$0xff] }
   0x2   :  { %v33_v1 = vld [vmem:[%s674_s2 + $0x2] sm:$0x3]  ;;  %113 = vrot.lane.b32.xlu0 %v598_v0, %s541_s9  ;;  %v32_v4 = vld [vmem:[%s674_s2] sm:$0x3] }
   0x3   :  { %v31_v3 = vld [vmem:[%s673_s1] sm:$0xff]  ;;  %448 = vmatpush3.msk.msra.mxu1 %vm38_vm0, %v33_v1 }
   0x4   :  { %v199_v5 = vld [vmem:[%s676_s4] sm:$0xff] }
   0x5   :  { %13 = vsyncpa [#allocation3], 0  ;;  %450 = vmatmul.mubr.msk.f32.vlgmr.msra.gmra.mrb[0].mxu1 %vm34_vm1, %v31_v3  ;;  %452 = vmatprep.subr.mxu1 %v542_v2  ;;  %v484_v7 = vpack.c.bf16 %v200_v6, %v199_v5  ;;  %v544_v8 = vmov 0.0|0.0   ;;  %v201_v9 = vld [vmem:[%s676_s4 + $0x10] sm:$0xff]  ;;  %v202_v10 = vld [vmem:[%s676_s4 + $0x18] sm:$0xff]  ;;  %vm214_vm3 = vcmask 523264   ;;  %v391_v53 = vlaneseq }
   0x6   :  { %453 = vmatpush3.msk.msra.mxu1 %vm38_vm0, %v32_v4  ;;  %454 = vmatprep.mubr.msk.f32.mxu1 %vm543_vm2, %v542_v2  ;;  %v487_v11 = vpack.c.bf16 %v202_v10, %v201_v9  ;;  %v203_v13 = vld [vmem:[%s676_s4 + $0x20] sm:$0xff]  ;;  %v204_v14 = vld [vmem:[%s676_s4 + $0x28] sm:$0xff]  ;;  %v205_v16 = vld [vmem:[%s676_s4 + $0x30] sm:$0xff]  ;;  %vm298_vm4 = vcmask 130048   ;;  %s546_s13 = smov 1   ;;  %v547_v39 = vmov 0  }
   0x7   :  { %483 = vmatprep.subr.bf16.mxu0 %v544_v8  ;;  %473 = vmatprep.mubr.msk.f32.mxu0 %vm543_vm2, %v542_v2  ;;  %v490_v15 = vpack.c.bf16 %v204_v14, %v203_v13  ;;  %v206_v17 = vld [vmem:[%s676_s4 + $0x38] sm:$0xff]  ;;  %v426_v22 = vld [vmem:[%s675_s3] ss:$0 sm:$0xff]  ;;  %v290_v28 = vld [vmem:[%s678_s6 + $0x8] sm:$0xff]  ;;  %v548_v40 = vmov 1   ;;  %v392_v54 = vand.u32 127, %v391_v53 }
   0x8   :  { %485 = vmatpush3.bf16.msra.mxu0 %v484_v7  ;;  %495 = vmatprep.subr.bf16.mxu1 %v544_v8  ;;  %v493_v18 = vpack.c.bf16 %v206_v17, %v205_v16  ;;  %v289_v27 = vld [vmem:[%s678_s6] sm:$0xff]  ;;  %s545_s6 = smov 127  }
   0x9   :  { %486 = vmatprep.subr.bf16.mxu0 %v544_v8  ;;  %v496_v29 = vpack.c.bf16 %v290_v28, %v289_v27  ;;  %v427_v30 = vld [vmem:[%s677_s5] ss:$0 sm:$0xff]  ;;  %508 = vset.pattern.permute.xlu0 %v547_v39  ;;  %vm394_vm5 = vcmp.eq.s32.totalorder %v392_v54, 14  ;;  %s549_s5 = smov [#allocation2]   ;;  %vm393_vm6 = vcmp.lt.s32.totalorder %v392_v54, 14 }
   0xa   :  { %v429_v35 = vld [vmem:[%s679_s7] ss:$0 sm:$0xff]  ;;  %507 = vset.pattern.permute.xlu1 %v548_v40  ;;  %s414_s7 = sshll.u32 %s549_s5, 4  ;;  %s415_s7 = int_to_ptr.vmem [resolvable:$true] %s414_s7 }
   0xb   :  { %s517_s0 = scalar_lea.vmem %s415_s7, 128  ;;  %p522_p1 = scmp.lt.s32.totalorder %s415_s7, %s415_s7 }
   0xc   :  { %488 = vmatpush3.bf16.msra.mxu0 %v487_v11  ;;  %p518_p0 = scmp.ne.s32.totalorder %s415_s7, %s517_s0  ;;  %p523_p2 = scmp.lt.s32.totalorder %s517_s0, %s517_s0 }
   0xd   :  { %489 = vmatprep.subr.bf16.mxu0 %v544_v8 }
   0xe   :  { %p524_p3 = por %p523_p2, %p522_p1 }
  0x10   :  { %491 = vmatpush3.bf16.msra.mxu0 %v490_v15  ;;  %p525_p4 = pnand %p524_p3, %p518_p0 }
  0x11   :  { %492 = vmatprep.subr.bf16.mxu0 %v544_v8 }
  0x14   :  { %494 = vmatpush3.bf16.msra.mxu0 %v493_v18 }
  0x74   :  { %v114_v12 = vpop.permute.xlu0 %113 }
  0x75   :  { %455 = vmatmul.mubr.msk.f32.vlgmr.msra.gmra.mrb[2].mxu1 %vm34_vm1, %v114_v12 }
  0x76   :  { %480 = vmatprep.mubr.msk.f32.mxu1 %vm543_vm2, %v542_v2  ;;  %497 = vmatpush3.bf16.msra.mxu1 %v496_v29 }
  0xd8   :  { %v108_v19 = vpop.f32.mrb[0].mxu1 }
  0xd9   :  { %v451_v20 = vpop.f32.mrb[1].mxu1 }
 0x148   :  { %v186_v21 = vpop.f32.mrb[2].mxu1 }
 0x149   :  { %v187_v23 = vadd.f32 %v186_v21, %v108_v19  ;;  %v456_v24 = vpop.f32.mrb[3].mxu1 }
 0x14b   :  { %v197_v25 = vadd.f32 %v426_v22, %v187_v23 }
 0x14d   :  { %v198_v26 = vmax.f32 %v197_v25, 0.0 }
 0x14f   :  { %474 = vmatmul.mubr.msk.f32.vlgmr.msra.gmra.mrb[0].mxu0 %vm214_vm3, %v198_v26 }
 0x222   :  { %v284_v31 = vpop.f32.mrb[0].mxu0 }
 0x223   :  { %v285_v32 = vadd.f32 %v427_v30, %v284_v31  ;;  %v475_v33 = vpop.f32.mrb[1].mxu0 }
 0x225   :  { %v288_v34 = vmax.f32 %v285_v32, 0.0 }
 0x227   :  { %481 = vmatmul.mubr.msk.f32.vlgmr.msra.gmra.mrb[4].mxu1 %vm298_vm4, %v288_v34 }
 0x2fa   :  { %v368_v36 = vpop.f32.mrb[4].mxu1 }
 0x2fb   :  { %v369_v37 = vadd.f32 %v429_v35, %v368_v36  ;;  %v482_v38 = vpop.f32.mrb[5].mxu1 }
 0x2fd   :  { %382 = vrot.lane.b32.xlu1 %v369_v37, %s545_s6  ;;  %373 = vrot.lane.b32.xlu0 %v369_v37, %s546_s13 }
 0x36f   :  { %v383_v41 = vpop.permute.xlu1 %382  ;;  %v374_v42 = vpop.permute.xlu0 %373 }
 0x370   :  { %v385_v43 = vsub.f32 %v369_v37, %v383_v41  ;;  %v376_v44 = vsub.f32 %v369_v37, %v374_v42 }
 0x372   :  { %v386_v45 = vmul.f32 1.442695, %v385_v43  ;;  %v377_v46 = vmul.f32 1.442695, %v376_v44 }
 0x374   :  { %509 = vpow2.f32 %v386_v45 }
 0x375   :  { %511 = vpow2.f32 %v377_v46 }
 0x37e   :  { %v510_v47 = vpop.eup %509 }
 0x37f   :  { %v512_v48 = vpop.eup %511  ;;  %v388_v49 = vadd.f32 1.0, %v510_v47 }
 0x380   :  { %v379_v50 = vadd.f32 1.0, %v512_v48 }
 0x381   :  { %513 = vrcp.f32 %v388_v49 }
 0x382   :  { %515 = vrcp.f32 %v379_v50 }
 0x38b   :  { %v514_v51 = vpop.eup %513 }
 0x38c   :  { %v516_v52 = vpop.eup %515  ;;  %402 = vperm.xlu0 %508, %v514_v51  }
 0x38d   :  { %397 = vperm.xlu1 %507, %v516_v52  }
 0x40b   :  { %v403_v55 = vpop.permute.xlu0 %402 }
 0x40c   :  { %v398_v56 = vpop.permute.xlu1 %397 }
 0x40d   :  { %v405_v57 = vsel %vm394_vm5, %v398_v56, %v403_v55 }
 0x40e   :  { %v406_v58 = vsel %vm393_vm6, %v598_v0, %v405_v57 }
 0x40f   :  { %407 = vst.msk [vmem:[#allocation2] sm:$0xff] %vm298_vm4, %v406_v58 }
 0x410   :  { %528 = shalt.err (!%p525_p4)
}
 0x411   :  { %s529_s16 = scalar_lea.hbm %s680_s8, 128 }
 0x412   :  { %p530_p5 = scmp.ne.s32.totalorder %s680_s8, %s529_s16  ;;  %p533_p6 = scmp.lt.u32.totalorder %s529_s16, %s680_s8 }
 0x414   :  { %p535_p7 = pnand %p533_p6, %p530_p5 }
 0x416   :  { %538 = shalt.err (!%p535_p7)
}
 0x417   :  { %417 = dma.vmem_to_hbm [thread:$0]  %s415_s7, 128, %s680_s8, [#allocation3]  }
 0x418   :  { %539 = dma.done.wait [#allocation3], 128  }
 0x419   :  { %540 = vsyncadd [#allocation3], 4294967168 }
 0x41a   :  { %421 = vsyncpa [#allocation3], 1 }

</bundles_post_ra>
